<compile_context>
chip_gen: v7x
topology: tpu7x:2x2x1
jax: 0.10.0
libtpu: 0.0.40
codegen_flags: <defaults>
</compile_context>

<pallas_src>
import functools

import jax
import jax.numpy as jnp
import numpy as np
from jax.experimental import pallas as pl
from jax.experimental.pallas import tpu as pltpu


# ------------------------- device / tiling helpers --------------------------

def _round_up(x, m):
    return (x + m - 1) // m * m


def _vmem_budget_bytes():
    """Generation-aware VMEM budget.

    v5e/v6e have 128 MiB of physical VMEM, v7x only 64 MiB.  Returns
    (working_set_budget, vmem_limit_bytes); ~25% headroom is left above the
    working set for Pallas' own pipelining buffers.
    """
    cap = 64 << 20  # conservative default (v7x physical size)
    try:
        cap = int(pltpu.get_tpu_info().vmem_capacity_bytes)
    except Exception:  # non-TPU backend / older API: stay conservative
        pass
    vmem_limit = (64 << 20) if cap >= (128 << 20) else (32 << 20)
    budget = (vmem_limit * 3) // 4
    return budget, vmem_limit


def _choose_tile_hw(hw, c, o, itemsize, budget, target_bytes=2 << 20):
    """HW tile for the two-pass (streaming) path, sized by BYTES.

    Aim for ~2 MiB of x per tile so the ~0.35us fixed per-grid-step cost and
    small strided DMAs are amortized; shrink (128-lane granularity) until the
    double-buffered conv working set fits the VMEM budget.  Prefer a tile that
    divides HW exactly so every DMA is full-width (no ragged tail)."""
    hw128 = _round_up(hw, 128)
    tile = _round_up(max(128, target_bytes // max(1, c * itemsize)), 128)
    tile = min(tile, hw128)

    def conv_step_bytes(t):
        # double-buffered x + out tiles + resident per-sample weight block
        return 2 * itemsize * (c + o) * t + 2 * itemsize * o * c

    while tile > 128 and conv_step_bytes(tile) > budget:
        tile = max(128, _round_up(tile // 2, 128))

    if hw % 128 == 0 and hw % tile != 0:
        t = tile
        while t >= max(128, tile // 2):
            if hw % t == 0:
                return t
            t -= 128
    return tile


# ------------------------- fused single-pass kernel --------------------------

def _fused_kernel(x_ref, rwt_ref, rb_ref, ew_ref, o_ref, *, inv_hw):
    """Whole forward for one sample; x is read from HBM exactly once.

    x_ref  : (1, C, HW)  per-sample activation slab (lane-dense HW)
    rwt_ref: (C, E)      routing Linear weight, transposed
    rb_ref : (1, E)      routing Linear bias
    ew_ref : (O, C, E)   expert weights, experts on the lane axis
    o_ref  : (1, O, HW)
    """
    x = x_ref[0]                                                       # (C, HW)
    # global average pool, accumulated in float32 (bf16-safe)
    pooled = jnp.sum(x.astype(jnp.float32), axis=-1, keepdims=True) * inv_hw   # (C, 1)
    # routing = sigmoid(Linear(pooled)); everything stays in float32
    logits = jnp.sum(rwt_ref[...].astype(jnp.float32) * pooled, axis=0,
                     keepdims=True) + rb_ref[...].astype(jnp.float32)  # (1, E)
    r = 1.0 / (1.0 + jnp.exp(-logits))                                 # (1, E)
    # per-sample expert mix: weighted sum over the expert (lane) axis
    w = jnp.sum(ew_ref[...].astype(jnp.float32) * r.reshape(1, 1, -1), axis=-1)  # (O, C)
    # 1x1 conv == matmul with the resident slab
    out = jnp.dot(w.astype(x.dtype), x, preferred_element_type=jnp.float32)
    o_ref[0] = out.astype(o_ref.dtype)


def _fused_forward(x_flat, rwt, rb, ew_oce, vmem_limit):
    B, C, HW = x_flat.shape
    O, _, E = ew_oce.shape
    itemsize = x_flat.dtype.itemsize
    kernel = functools.partial(_fused_kernel, inv_hw=1.0 / float(HW))
    return pl.pallas_call(
        kernel,
        out_shape=jax.ShapeDtypeStruct((B, O, HW), x_flat.dtype),
        grid=(B,),
        in_specs=[
            pl.BlockSpec((1, C, HW), lambda b: (b, 0, 0)),
            # parameter blocks have a constant index -> stay resident in VMEM
            pl.BlockSpec((C, E), lambda b: (0, 0)),
            pl.BlockSpec((1, E), lambda b: (0, 0)),
            pl.BlockSpec((O, C, E), lambda b: (0, 0, 0)),
        ],
        out_specs=pl.BlockSpec((1, O, HW), lambda b: (b, 0, 0)),
        compiler_params=pltpu.CompilerParams(
            dimension_semantics=("parallel",),           # B splits across v7x TCs
            vmem_limit_bytes=vmem_limit),
        cost_estimate=pl.CostEstimate(
            flops=int(B * (2 * O * C * HW + C * HW + 2 * E * C + 2 * E * O * C)),
            transcendentals=int(B * E),
            bytes_accessed=int(itemsize * B * (C + O) * HW
                               + 4 * (C * E + E + O * C * E))),
    )(x_flat, rwt, rb, ew_oce)


# ------------------------- two-pass streaming fallback ----------------------

def _global_avg_pool_kernel(x_ref, o_ref, acc_ref, *, tile_hw, hw_true, ragged):
    # x_ref: (1, C, tile_hw)  o_ref: (1, 1, 1, C) f32  acc_ref: (1, C) f32 scratch
    i = pl.program_id(2)

    @pl.when(i == 0)
    def _():
        acc_ref[...] = jnp.zeros_like(acc_ref)

    xf = x_ref[...].astype(jnp.float32)
    if ragged:
        # mask lanes past the true HW extent of the ragged last tile
        base = (pl.program_id(1) * pl.num_programs(2) + i) * tile_hw
        lane = base + jax.lax.broadcasted_iota(jnp.int32, xf.shape, 2)
        xf = jnp.where(lane < hw_true, xf, 0.0)
    acc_ref[...] += jnp.sum(xf, axis=-1)

    @pl.when(i == pl.num_programs(2) - 1)
    def _():
        o_ref[0, 0] = acc_ref[...]     # f32 partial sum for this HW split


def _condconv1x1_kernel(w_ref, x_ref, o_ref):
    # Per-sample 1x1 conv == matmul of the mixed weight with an HW tile.
    # w_ref: (1, O, C)  x_ref: (1, C, tile_hw)  o_ref: (1, O, tile_hw)
    o_ref[0] = jnp.dot(w_ref[0], x_ref[0],
                       preferred_element_type=jnp.float32).astype(o_ref.dtype)


def _global_avg_pool(x_flat, tile_hw, vmem_limit):
    """Streaming spatial mean -> (B, C) float32."""
    B, C, HW = x_flat.shape
    n_hw = pl.cdiv(HW, tile_hw)
    # Split the reduction so both v7x TensorCores have work even at B == 1
    # (harmless grid restructuring on single-core v5e/v6e).
    n_split = 2 if (B == 1 and n_hw >= 4 and n_hw % 2 == 0) else 1
    n_inner = n_hw // n_split
    itemsize = x_flat.dtype.itemsize
    kernel = functools.partial(_global_avg_pool_kernel, tile_hw=tile_hw,
                               hw_true=HW, ragged=(HW % tile_hw != 0))
    partial_sums = pl.pallas_call(
        kernel,
        out_shape=jax.ShapeDtypeStruct((B, n_split, 1, C), jnp.float32),
        grid=(B, n_split, n_inner),
        in_specs=[pl.BlockSpec((1, C, tile_hw),
                               lambda b, s, i: (b, 0, s * n_inner + i))],
        # output block index constant across the inner reduction axis
        out_specs=pl.BlockSpec((1, 1, 1, C), lambda b, s, i: (b, s, 0, 0)),
        scratch_shapes=[pltpu.VMEM((1, C), jnp.float32)],
        compiler_params=pltpu.CompilerParams(
            dimension_semantics=("parallel", "parallel", "arbitrary"),
            vmem_limit_bytes=vmem_limit),
        cost_estimate=pl.CostEstimate(
            flops=int(B * C * n_hw * tile_hw),
            transcendentals=0,
            bytes_accessed=int(itemsize * B * C * HW + 4 * B * n_split * C)),
    )(x_flat)
    return jnp.sum(partial_sums.reshape(B, n_split, C), axis=1) / float(HW)


def _condconv_1x1(w_mixed, x_flat, tile_hw, vmem_limit):
    """w_mixed: (B, O, C), x_flat: (B, C, HW) -> (B, O, HW). No padding/slicing:
    out-of-bounds columns of a ragged last tile are simply discarded by Pallas."""
    B, O, C = w_mixed.shape
    _, _, HW = x_flat.shape
    n_hw = pl.cdiv(HW, tile_hw)
    itemsize = x_flat.dtype.itemsize
    return pl.pallas_call(
        _condconv1x1_kernel,
        out_shape=jax.ShapeDtypeStruct((B, O, HW), x_flat.dtype),
        grid=(B, n_hw),
        in_specs=[
            # weight block index constant across inner HW axis -> stays resident
            pl.BlockSpec((1, O, C), lambda b, hw: (b, 0, 0)),
            pl.BlockSpec((1, C, tile_hw), lambda b, hw: (b, 0, hw)),
        ],
        out_specs=pl.BlockSpec((1, O, tile_hw), lambda b, hw: (b, 0, hw)),
        compiler_params=pltpu.CompilerParams(
            dimension_semantics=("parallel", "parallel"),
            vmem_limit_bytes=vmem_limit),
        cost_estimate=pl.CostEstimate(
            flops=int(2 * B * O * C * HW),
            transcendentals=0,
            bytes_accessed=int(itemsize * (B * (C + O) * HW + B * O * C))),
    )(w_mixed, x_flat)


# ------------------------- forward pass --------------------------------------

def dynamic_conv_single(x, params, *, force_two_pass=False, tile_hw_override=None):
    """Forward pass of DynamicConv_Single.

    x: (B, C_in, H, W) NCHW, same as PyTorch.
    params:
      routing_w : (E, C_in)     -- nn.Linear weight
      routing_b : (E,)          -- nn.Linear bias
      expert_w  : (E, O * C_in) -- CondConv2d expert weights (1x1 kernels)
    returns: (B, O, H, W)
    """
    B, C, H, W = x.shape
    E = params["routing_w"].shape[0]
    O = params["expert_w"].shape[1] // C
    HW = H * W
    itemsize = x.dtype.itemsize

    budget, vmem_limit = _vmem_budget_bytes()
    x_flat = x.reshape(B, C, HW)   # lane-dense spatial axis; no copy, no padding

    # --- fused single-pass path: per-sample slab fits the VMEM budget --------
    fused_bytes = 2 * itemsize * (C + O) * HW + 4 * (C * E + E + O * C * E)
    if not force_two_pass and fused_bytes <= budget:
        rwt = params["routing_w"].T.astype(jnp.float32)                 # (C, E)
        rb = params["routing_b"].reshape(1, E).astype(jnp.float32)      # (1, E)
        ew = params["expert_w"].reshape(E, O, C).transpose(1, 2, 0)     # (O, C, E)
        out = _fused_forward(x_flat, rwt, rb, ew.astype(jnp.float32), vmem_limit)
        return out.reshape(B, O, H, W)

    # --- two-pass streaming fallback for slabs that do not fit VMEM ----------
    tile_hw = tile_hw_override or _choose_tile_hw(HW, C, O, itemsize, budget)
    n_hw = pl.cdiv(HW, tile_hw)

    # 1) global average pool (f32). For tiny HW the custom call is pure overhead.
    if n_hw <= 2:
        pooled = jnp.mean(x_flat.astype(jnp.float32), axis=-1)           # (B, C)
    else:
        pooled = _global_avg_pool(x_flat, tile_hw, vmem_limit)           # (B, C) f32

    # 2) routing sigmoid(Linear) + 3) expert mix: tiny glue, kept in float32
    logits = (pooled @ params["routing_w"].T.astype(jnp.float32)
              + params["routing_b"].astype(jnp.float32))                 # (B, E)
    routing = jax.nn.sigmoid(logits)
    w_mixed = (routing @ params["expert_w"].astype(jnp.float32)
               ).reshape(B, O, C).astype(x.dtype)                        # (B, O, C)

    # 4) per-sample 1x1 conv == batched matmul over HW tiles
    out = _condconv_1x1(w_mixed, x_flat, tile_hw, vmem_limit)            # (B, O, HW)
    return out.reshape(B, O, H, W)


# ------------------------- parameter init -----------------------------------

def init_params(key, in_features, out_features, num_experts):
    k1, k2, k3 = jax.random.split(key, 3)
    # nn.Linear default: U(-1/sqrt(fan_in), 1/sqrt(fan_in))
    lin_bound = 1.0 / np.sqrt(in_features)
    routing_w = jax.random.uniform(k1, (num_experts, in_features),
                                   minval=-lin_bound, maxval=lin_bound,
                                   dtype=jnp.float32)
    routing_b = jax.random.uniform(k2, (num_experts,),
                                   minval=-lin_bound, maxval=lin_bound,
                                   dtype=jnp.float32)
    # CondConv kaiming_uniform(a=sqrt(5)) over expert shape (O, C, 1, 1)
    # -> bound = 1/sqrt(fan_in), fan_in = C
    conv_bound = 1.0 / np.sqrt(in_features)
    expert_w = jax.random.uniform(
        k3, (num_experts, out_features * in_features),
        minval=-conv_bound, maxval=conv_bound, dtype=jnp.float32)
    return {"routing_w": routing_w, "routing_b": routing_b, "expert_w": expert_w}


# ------------------------- main ----------------------------------------------

if __name__ == "__main__":
    B, C_IN, C_OUT, H, W, E = 2, 4, 8, 16, 16, 4

    key = jax.random.PRNGKey(0)
    kx, kp, kx2 = jax.random.split(key, 3)
    x = jax.random.normal(kx, (B, C_IN, H, W), dtype=jnp.float32)
    params = init_params(kp, C_IN, C_OUT, E)

    def reference(x, params, O):
        pooled = x.mean(axis=(2, 3))
        r = jax.nn.sigmoid(pooled @ params["routing_w"].T + params["routing_b"])
        w = (r @ params["expert_w"]).reshape(x.shape[0], O, x.shape[1])
        return jnp.einsum("boc,bchw->bohw", w, x)

    # ---- default module shapes: exercises the fused single-pass kernel -----
    out = jax.block_until_ready(dynamic_conv_single(x, params))
    np.testing.assert_allclose(np.asarray(out),
                               np.asarray(reference(x, params, C_OUT)),
                               rtol=1e-4, atol=1e-4)
    assert out.shape == (B, C_OUT, H, W)

    # ---- larger spatial extent: exercises the tiled two-pass fallback ------
    x2 = jax.random.normal(kx2, (1, C_IN, 32, 32), dtype=jnp.float32)
    out2 = jax.block_until_ready(
        dynamic_conv_single(x2, params, force_two_pass=True, tile_hw_override=256))
    np.testing.assert_allclose(np.asarray(out2),
                               np.asarray(reference(x2, params, C_OUT)),
                               rtol=1e-4, atol=1e-4)

    print("KERNEL_OK")
</pallas_src>

<mosaic_0001>
module attributes {stable_mosaic.version = 11 : i64} {
  func.func @_fused_kernel(%arg0: i32, %arg1: memref<1x4x256xf32, #tpu.memory_space<vmem>>, %arg2: memref<4x4xf32, #tpu.memory_space<vmem>>, %arg3: memref<1x4xf32, #tpu.memory_space<vmem>>, %arg4: memref<8x4x4xf32, #tpu.memory_space<vmem>>, %arg5: memref<1x8x256xf32, #tpu.memory_space<vmem>>) attributes {dimension_semantics = [#tpu.dimension_semantics<parallel>], iteration_bounds = array<i64: 2>, scalar_prefetch = 0 : i64, scratch_operands = 0 : i64, tpu.core_type = #tpu.core_type<tc>, window_params = [{transform_indices = @transform_0, window_bounds = array<i64: 1, 4, 256>}, {pipeline_mode = #tpu.pipeline_mode<synchronous>, transform_indices = @transform_1, window_bounds = array<i64: 4, 4>}, {pipeline_mode = #tpu.pipeline_mode<synchronous>, transform_indices = @transform_2, window_bounds = array<i64: 1, 4>}, {pipeline_mode = #tpu.pipeline_mode<synchronous>, transform_indices = @transform_3, window_bounds = array<i64: 8, 4, 4>}, {transform_indices = @transform_4, window_bounds = array<i64: 1, 8, 256>}]} {
    %c0 = arith.constant 0 : index
    %c0_0 = arith.constant 0 : index
    %c0_1 = arith.constant 0 : index
    %0 = vector.load %arg1[%c0, %c0_0, %c0_1] : memref<1x4x256xf32, #tpu.memory_space<vmem>>, vector<1x4x256xf32>
    %1 = vector.shape_cast %0 : vector<1x4x256xf32> to vector<4x256xf32>
    %cst = arith.constant dense<0.000000e+00> : vector<4xf32>
    %2 = vector.multi_reduction <add>, %1, %cst [1] : vector<4x256xf32> to vector<4xf32>
    %3 = vector.shape_cast %2 : vector<4xf32> to vector<4x1xf32>
    %cst_2 = arith.constant 3.906250e-03 : f32
    %4 = vector.broadcast %cst_2 : f32 to vector<4x1xf32>
    %5 = arith.mulf %3, %4 : vector<4x1xf32>
    %c0_3 = arith.constant 0 : index
    %c0_4 = arith.constant 0 : index
    %6 = vector.load %arg2[%c0_3, %c0_4] : memref<4x4xf32, #tpu.memory_space<vmem>>, vector<4x4xf32>
    %7 = vector.broadcast %5 : vector<4x1xf32> to vector<4x4xf32>
    %8 = arith.mulf %6, %7 : vector<4x4xf32>
    %cst_5 = arith.constant dense<0.000000e+00> : vector<4xf32>
    %9 = vector.multi_reduction <add>, %8, %cst_5 [0] : vector<4x4xf32> to vector<4xf32>
    %10 = vector.shape_cast %9 : vector<4xf32> to vector<1x4xf32>
    %c0_6 = arith.constant 0 : index
    %c0_7 = arith.constant 0 : index
    %11 = vector.load %arg3[%c0_6, %c0_7] : memref<1x4xf32, #tpu.memory_space<vmem>>, vector<1x4xf32>
    %12 = arith.addf %10, %11 : vector<1x4xf32>
    %cst_8 = arith.constant 0.000000e+00 : f32
    %13 = vector.broadcast %cst_8 : f32 to vector<1x4xf32>
    %14 = arith.subf %13, %12 : vector<1x4xf32>
    %15 = math.exp %14 : vector<1x4xf32>
    %cst_9 = arith.constant 1.000000e+00 : f32
    %16 = vector.broadcast %cst_9 : f32 to vector<1x4xf32>
    %17 = arith.addf %16, %15 : vector<1x4xf32>
    %cst_10 = arith.constant 1.000000e+00 : f32
    %18 = vector.broadcast %cst_10 : f32 to vector<1x4xf32>
    %19 = arith.divf %18, %17 : vector<1x4xf32>
    %c0_11 = arith.constant 0 : index
    %c0_12 = arith.constant 0 : index
    %c0_13 = arith.constant 0 : index
    %20 = vector.load %arg4[%c0_11, %c0_12, %c0_13] : memref<8x4x4xf32, #tpu.memory_space<vmem>>, vector<8x4x4xf32>
    %21 = vector.shape_cast %19 : vector<1x4xf32> to vector<1x1x4xf32>
    %22 = vector.broadcast %21 : vector<1x1x4xf32> to vector<8x4x4xf32>
    %23 = arith.mulf %20, %22 : vector<8x4x4xf32>
    %cst_14 = arith.constant dense<0.000000e+00> : vector<8x4xf32>
    %24 = vector.multi_reduction <add>, %23, %cst_14 [2] : vector<8x4x4xf32> to vector<8x4xf32>
    %cst_15 = arith.constant dense<0.000000e+00> : vector<8x256xf32>
    %25 = tpu.matmul %24, %1, %cst_15 {dimension_numbers = #tpu.dot_dimension_numbers<[1], [0], [0], [1], [0, 0, 1, 1], [], []>} : vector<8x4xf32>, vector<4x256xf32>, vector<8x256xf32> -> vector<8x256xf32>
    %c0_16 = arith.constant 0 : index
    %c0_17 = arith.constant 0 : index
    %c0_18 = arith.constant 0 : index
    %26 = vector.load %arg5[%c0_16, %c0_17, %c0_18] : memref<1x8x256xf32, #tpu.memory_space<vmem>>, vector<1x8x256xf32>
    %27 = vector.shape_cast %26 : vector<1x8x256xf32> to vector<8x256xf32>
    %28 = vector.shape_cast %25 : vector<8x256xf32> to vector<1x8x256xf32>
    tpu.vector_store %arg5[%c0_16, %c0_17, %c0_18], %28 {strides = array<i32>} : memref<1x8x256xf32, #tpu.memory_space<vmem>>, vector<1x8x256xf32>,
    return
  }
  func.func @transform_0(%arg0: i32) -> (i32, i32, i32) {
    %c0_i32 = arith.constant 0 : i32
    %c0_i32_0 = arith.constant 0 : i32
    %c0_i32_1 = arith.constant 0 : i32
    return %arg0, %c0_i32, %c0_i32_0 : i32, i32, i32
  }
  func.func @transform_1(%arg0: i32) -> (i32, i32) {
    %c0_i32 = arith.constant 0 : i32
    %c0_i32_0 = arith.constant 0 : i32
    %c0_i32_1 = arith.constant 0 : i32
    return %c0_i32, %c0_i32_0 : i32, i32
  }
  func.func @transform_2(%arg0: i32) -> (i32, i32) {
    %c0_i32 = arith.constant 0 : i32
    %c0_i32_0 = arith.constant 0 : i32
    %c0_i32_1 = arith.constant 0 : i32
    return %c0_i32, %c0_i32_0 : i32, i32
  }
  func.func @transform_3(%arg0: i32) -> (i32, i32, i32) {
    %c0_i32 = arith.constant 0 : i32
    %c0_i32_0 = arith.constant 0 : i32
    %c0_i32_1 = arith.constant 0 : i32
    %c0_i32_2 = arith.constant 0 : i32
    return %c0_i32, %c0_i32_0, %c0_i32_1 : i32, i32, i32
  }
  func.func @transform_4(%arg0: i32) -> (i32, i32, i32) {
    %c0_i32 = arith.constant 0 : i32
    %c0_i32_0 = arith.constant 0 : i32
    %c0_i32_1 = arith.constant 0 : i32
    return %arg0, %c0_i32, %c0_i32_0 : i32, i32, i32
  }
}

</mosaic_0001>

<bundles_post_ra>
// kernel: tpu_custom_call.1
= control target key start
LH: loop header
LB: loop body
LE: loop exit
PB: predicated region body
PF: predicated region fallthrough
CT: control target
= control target key end

     0   :  { %9 = vsyncpa [#allocation3], 0  ;;  %s771_s0 = inlined_call_operand.vmem [shape: f32[2,4,256], index: 0, kind: input, shape index: {}]   ;;  %s772_s1 = inlined_call_operand.vmem [shape: f32[4,4], index: 1, kind: input, shape index: {}]   ;;  %s773_s2 = inlined_call_operand.vmem [shape: f32[1,4], index: 2, kind: input, shape index: {}]   ;;  %s774_s3 = inlined_call_operand.vmem [shape: f32[8,4,4], index: 3, kind: input, shape index: {}]   ;;  %s775_s4 = inlined_call_operand.hbm [shape: f32[2,8,256], index: 4, kind: output, shape index: {}]  }
   0x1   :  { %11 = vsyncpa [#allocation3 + $0x1], 0  ;;  %s632_s15 = smov 0   ;;  %s634_s16 = smov 0  }
   0x2   :  { %s636_s17 = smov 0   ;;  %s638_s18 = smov 0  }
   0x3 LB: > { %s653_s19 = sadd.s32 4294967295, %s603_s18   ;;  %s479_s20 = sadd.s32 4294967294, %s603_s18   ;;  %s603_s18 = sphi %s638_s18, %s781_s18   ;;  %s599_s17 = sphi %s636_s17, %s780_s17   ;;  %s595_s16 = sphi %s634_s16, %s779_s16   ;;  %s591_s15 = sphi %s632_s15, %s778_s15  }
   0x4   : > { %s657_s21 = sadd.s32 1, %s603_s18   ;;  %s113_s22 = sadd.s32 1, %s599_s17 }
   0x5   : > { %s110_s23 = ssub.s32 %s603_s18, %s657_s21  ;;  %p123_p0 = scmp.ne.s32.totalorder %s599_s17, %s595_s16 }
   0x6   : > { %p111_p1 = scmp.eq.s32.totalorder %s110_s23, 0  ;;  %p124_p2 = scmp.eq.s32.totalorder %s653_s19, 1 }
   0x7   : > { %p129_p3 = scmp.ne.s32.totalorder %s595_s16, %s591_s15  ;;  %p130_p4 = scmp.eq.s32.totalorder %s479_s20, 1 }
   0x8   : > { %s668_s24 = scalar_select %p111_p1, %s599_s17, %s113_s22  }
   0x9   : > { %p670_p5 = por %p124_p2, %p123_p0  ;;  %p674_p6 = por %p130_p4, %p129_p3 }
   0xa   : > { %p482_p7 = scmp.ge.s32.totalorder %s603_s18, 1  ;;  %p165_p8 = scmp.lt.s32.totalorder %s603_s18, 3 }
   0xc   : > { %p166_p9 = pnand %p482_p7, %p165_p8 }
   0xd   : > { %p191_p10 = scmp.lt.s32.totalorder (!%p166_p9), %s653_s19, 1  ;;  %vm200_vm0 = vcmask (!%p166_p9), 1043456   ;;  %v207_v5 = vld [vmem:[%s772_s1] sm:$0xf] (!%p166_p9)  ;;  %vm209_vm1 = vcmask (!%p166_p9), 27648   ;;  %v233_v22 = vlaneseq (!%p166_p9)  ;;  %v605_v51 = vmov (!%p166_p9), 0.0  }
   0xe   : > { %169 = sbr.rel (%p166_p9) target bundleno = 610 (0x262), region = 36  ;;  %v217_v15 = vld [vmem:[%s773_s2] sm:$0x1] (!%p166_p9)  ;;  %v226_v26 = vld [vmem:[%s774_s3 + $0x4] sm:$0xf] (!%p166_p9)  ;;  %396 = vmatprep.mubr.f32.mxu0 (!%p166_p9), %v605_v51  ;;  %vm311_vm2 = vcmask (!%p166_p9), 1041409  }
   0xf   : > { %v234_v23 = vshrl.u32 (!%p166_p9), %v233_v22, 7  ;;  %v225_v27 = vld [vmem:[%s774_s3] sm:$0xf] (!%p166_p9)  ;;  %v227_v29 = vld [vmem:[%s774_s3 + $0x8] sm:$0xf] (!%p166_p9)  ;;  %v278_v52 = vand.u32 (!%p166_p9), 127, %v233_v22 }
  0x10   : > { %v228_v30 = vld [vmem:[%s774_s3 + $0xc] sm:$0xf] (!%p166_p9)  ;;  %v229_v37 = vld [vmem:[%s774_s3 + $0x10] sm:$0xf] (!%p166_p9)  ;;  %v230_v38 = vld [vmem:[%s774_s3 + $0x14] sm:$0xf] (!%p166_p9) }
  0x11   : > { %v235_v24 = vsub.s32 (!%p166_p9), 0, %v234_v23  ;;  %v231_v43 = vld [vmem:[%s774_s3 + $0x18] sm:$0xf] (!%p166_p9)  ;;  %v232_v44 = vld [vmem:[%s774_s3 + $0x1c] sm:$0xf] (!%p166_p9)  ;;  %v281_v53 = vsub.s32 (!%p166_p9), %v278_v52, %v234_v23  ;;  %vm313_vm3 = vcmask (!%p166_p9), 1042434  }
  0x12   : > { %vm315_vm4 = vcmask (!%p166_p9), 1043459   ;;  %vm317_vm5 = vcmask (!%p166_p9), 1044484   ;;  %vm319_vm6 = vcmask (!%p166_p9), 1045509   ;;  %vm321_vm7 = vcmask (!%p166_p9), 1046534   ;;  %s188_s9 = sand.u32 (!%p166_p9), 1, %s595_s16   ;;  %s495_s13 = sshll.u32 (!%p166_p9), %s653_s19, 8 }
  0x13   : > { %vm323_vm8 = vcmask (!%p166_p9), 1047559   ;;  %vm325_vm9 = vcmask (!%p166_p9), 31744   ;;  %s483_s10 = sshll.u32 (!%p166_p9), %s188_s9, 4  ;;  %s731_s22 = scalar_lea.hbm (!%p166_p9), %s775_s4, %s495_s13 }
  0x14   : > { %s190_s11 = scalar_lea.vmem (!%p166_p9), [#allocation2], %s483_s10  ;;  %s406_s23 = scalar_lea.sflag (!%p166_p9), [#allocation3], %s188_s9 }
  0x15   : > { %s192_s27 = scalar_select %p191_p10, %s653_s19, 1 }
  0x16   : > { %s420_s12 = sshll.u32 %s190_s11, 4  ;;  %s606_s19 = smov [#allocation2]   ;;  %s726_s12 = int_to_ptr.vmem [resolvable:$true] %s420_s12 }
  0x17   : > { %s494_s28 = sshll.u32 %s192_s27, 3  ;;  %s541_s27 = scalar_lea.vmem %s726_s12, 256 }
  0x18   : > { %s195_s5 = scalar_lea.vmem %s771_s0, %s494_s28  ;;  %p542_p11 = scmp.ne.s32.totalorder %s726_s12, %s541_s27 }
  0x19   : > { %v196_v0 = vld [vmem:[%s195_s5] sm:$0xff]  ;;  %s545_s28 = sshll.u32 %s606_s19, 4  ;;  %s546_s28 = int_to_ptr.vmem [resolvable:$false] %s545_s28 }
  0x1a   : > { %v198_v1 = vcombine.high %v196_v0, %v196_v0  ;;  %v201_v2 = vsel %vm200_vm0, %v196_v0, 0.0  ;;  %p543_p12 = pnand %p542_p11, %p670_p5  ;;  %s547_s29 = scalar_lea.vmem %s546_s28, 512 }
  0x1b   : > { %p548_p0 = scmp.lt.s32.totalorder %s726_s12, %s546_s28  ;;  %p549_p1 = scmp.lt.s32.totalorder %s547_s29, %s541_s27 }
  0x1c   : > { %v202_v3 = vsel %vm200_vm0, %v198_v1, 0.0  ;;  %486 = vmatprep.subr.msk.mxu0 %vm200_vm0, %v198_v1  ;;  %p544_p13 = pneg %p543_p12 }
  0x1d   : > { %v203_v4 = vadd.f32 %v202_v3, %v201_v2  ;;  %487 = vmatpush1.msk.msra.mxu0 %vm200_vm0, %v196_v0  ;;  %p550_p2 = por %p549_p1, %p548_p0 }
  0x1f   : > { %204 = vadd.xlane.f32.xlu0 %v203_v4  ;;  %p551_p3 = pnand %p550_p2, %p544_p13 }
  0xac   : > { %v205_v6 = vpop.xlane.xlu0 %204 }
  0xad   : > { %v206_v7 = vmul.f32 0.00390625, %v205_v6 }
  0xaf   : > { %v208_v8 = vmul.f32 %v207_v5, %v206_v7 }
  0xb1   : > { %v210_v9 = vsel %vm209_vm1, %v208_v8, 0.0 }
  0xb2   : > { %v211_v10 = vrot.slane %v210_v9, 4 }
  0xb4   : > { %v212_v11 = vadd.f32 %v211_v10, %v210_v9 }
  0xb6   : > { %v213_v12 = vrot.slane %v212_v11, 2 }
  0xb8   : > { %v214_v13 = vadd.f32 %v213_v12, %v212_v11 }
  0xba   : > { %v215_v14 = vrot.slane %v214_v13, 1 }
  0xbc   : > { %v216_v16 = vadd.f32 %v215_v14, %v214_v13 }
  0xbe   : > { %v218_v17 = vadd.f32 %v217_v15, %v216_v16 }
  0xc0   : > { %v219_v18 = vsub.f32 0.0, %v218_v17 }
  0xc2   : > { %v220_v19 = vmul.f32 1.442695, %v219_v18 }
  0xc4   : > { %537 = vpow2.f32 %v220_v19 }
  0xce   : > { %v538_v20 = vpop.eup %537 }
  0xcf   : > { %v222_v21 = vadd.f32 1.0, %v538_v20 }
  0xd1   : > { %539 = vrcp.f32 %v222_v21 }
  0xdb   : > { %v540_v25 = vpop.eup %539 }
  0xdc   : > { %v236_v28 = vrot.slane %v540_v25, %v235_v24 }
  0xde   : > { %v238_v31 = vmul.f32 %v236_v28, %v226_v26  ;;  %v237_v32 = vmul.f32 %v236_v28, %v225_v27  ;;  %v239_v35 = vmul.f32 %v236_v28, %v227_v29  ;;  %v240_v36 = vmul.f32 %v236_v28, %v228_v30 }
  0xdf   : > { %v241_v41 = vmul.f32 %v236_v28, %v229_v37  ;;  %v242_v42 = vmul.f32 %v236_v28, %v230_v38  ;;  %v243_v47 = vmul.f32 %v236_v28, %v231_v43  ;;  %v244_v48 = vmul.f32 %v236_v28, %v232_v44 }
  0xe0   : > { %v248_v33 = vsel %vm209_vm1, %v238_v31, 0.0  ;;  %v245_v34 = vsel %vm209_vm1, %v237_v32, 0.0  ;;  %v251_v39 = vsel %vm209_vm1, %v239_v35, 0.0  ;;  %v254_v40 = vsel %vm209_vm1, %v240_v36, 0.0 }
  0xe1   : > { %249 = vadd.xlane.f32.xlu1 %v248_v33  ;;  %246 = vadd.xlane.f32.xlu0 %v245_v34  ;;  %v257_v45 = vsel %vm209_vm1, %v241_v41, 0.0  ;;  %v260_v46 = vsel %vm209_vm1, %v242_v42, 0.0  ;;  %v263_v49 = vsel %vm209_vm1, %v243_v47, 0.0  ;;  %v266_v50 = vsel %vm209_vm1, %v244_v48, 0.0 }
  0xe5   : > { %252 = vadd.xlane.f32.xlu1 %v251_v39  ;;  %255 = vadd.xlane.f32.xlu0 %v254_v40 }
  0xe9   : > { %258 = vadd.xlane.f32.xlu1 %v257_v45  ;;  %261 = vadd.xlane.f32.xlu0 %v260_v46 }
  0xed   : > { %264 = vadd.xlane.f32.xlu1 %v263_v49  ;;  %267 = vadd.xlane.f32.xlu0 %v266_v50 }
 0x16e   : > { %v250_v54 = vpop.xlane.xlu1 %249  ;;  %v247_v55 = vpop.xlane.xlu0 %246 }
 0x16f   : > { %v286_v56 = vrot.slane %v250_v54, %v281_v53  ;;  %v282_v57 = vrot.slane %v247_v55, %v281_v53 }
 0x171   : > { %v312_v61 = vsel %vm311_vm2, %v286_v56, %v282_v57 }
 0x172   : > { %v253_v58 = vpop.xlane.xlu1 %252  ;;  %v256_v59 = vpop.xlane.xlu0 %255 }
 0x173   : > { %v290_v60 = vrot.slane %v253_v58, %v281_v53  ;;  %v294_v62 = vrot.slane %v256_v59, %v281_v53 }
 0x175   : > { %v314_v63 = vsel %vm313_vm3, %v290_v60, %v312_v61 }
 0x176   : > { %v259_v0 = vpop.xlane.xlu1 %258  ;;  %v262_v1 = vpop.xlane.xlu0 %261  ;;  %v316_v3 = vsel %vm315_vm4, %v294_v62, %v314_v63 }
 0x177   : > { %v298_v2 = vrot.slane %v259_v0, %v281_v53  ;;  %v302_v4 = vrot.slane %v262_v1, %v281_v53 }
 0x179   : > { %v318_v5 = vsel %vm317_vm5, %v298_v2, %v316_v3 }
 0x17a   : > { %v265_v6 = vpop.xlane.xlu1 %264  ;;  %v268_v7 = vpop.xlane.xlu0 %267  ;;  %v320_v10 = vsel %vm319_vm6, %v302_v4, %v318_v5 }
 0x17b   : > { %v306_v8 = vrot.slane %v265_v6, %v281_v53  ;;  %v310_v9 = vrot.slane %v268_v7, %v281_v53 }
 0x17d   : > { %v322_v11 = vsel %vm321_vm7, %v306_v8, %v320_v10 }
 0x17e   : > { %v324_v12 = vsel %vm323_vm8, %v310_v9, %v322_v11 }
 0x17f   : > { %488 = vmatmul.mubr.msk.f32.vlgmr.msra.gmra.mrb[0].mxu0 %vm325_vm9, %v324_v12 }
 0x252   : > { %v398_v13 = vpop.f32.mrb[0].mxu0 }
 0x253   : > { %403 = vst [vmem:[%s190_s11] sm:$0xff] %v398_v13  ;;  %v400_v14 = vpop.f32.mrb[1].mxu0 }
 0x254   : > { %404 = vst [vmem:[%s190_s11 + $0x8] sm:$0xff] %v400_v14 }
 0x255   : > { %554 = shalt.err (!%p551_p3)
}
 0x256   : > { %s555_s30 = scalar_lea.hbm %s731_s22, 256  ;;  %s559_s7 = scalar_lea.hbm %s775_s4, 512 }
 0x257   : > { %p556_p4 = scmp.ne.s32.totalorder %s731_s22, %s555_s30  ;;  %p560_p9 = scmp.lt.u32.totalorder %s731_s22, %s775_s4 }
 0x258   : > { %p561_p10 = scmp.lt.u32.totalorder %s559_s7, %s555_s30  ;;  %p563_p12 = scmp.lt.u32.totalorder %s555_s30, %s731_s22 }
 0x259   : > { %p557_p7 = pnand %p556_p4, %p670_p5 }
 0x25a   : > { %p562_p11 = por %p561_p10, %p560_p9 }
 0x25b   : > { %p558_p8 = pneg %p557_p7 }
 0x25c   : > { %p564_p13 = por %p563_p12, %p562_p11 }
 0x25e   : > { %p565_p0 = pnand %p564_p13, %p558_p8 }
 0x260   : > { %568 = shalt.err (!%p565_p0)
}
 0x261   : > { %496 = dma.vmem_to_hbm [thread:$0]  (%p670_p5), %s726_s12, 256, %s731_s22, %s406_s23  }
 0x262 PF: > { %p502_p1 = scmp.ge.s32.totalorder %s603_s18, 2  ;;  %s432_s10 = sand.u32 1, %s591_s15  }
 0x263   : > { %s433_s11 = scalar_lea.sflag [#allocation3], %s432_s10 }
 0x264   : > { %p499_p2 = pnand %p502_p1, %p674_p6 }
 0x266   : > { %586 = dma.done.wait (!%p499_p2), %s433_s11, 256  }
 0x267   : > { %588 = vsyncadd (!%p499_p2), %s433_s11, 4294967040  ;;  %p14_p3 = scmp.ge.s32.totalorder %s657_s21, 4   ;;  %s778_s15 = smov %s595_s16 }
 0x268   : > { %s779_s16 = smov %s599_s17  ;;  %s780_s17 = smov %s668_s24 }
 0x269   : > { %s781_s18 = smov %s657_s21  ;;  %16 = sbr.rel (!%p14_p3) target bundleno = 3 (0x3), region = 71 }
 0x270   :  { %438 = vsyncpa [#allocation3], 1 }
 0x271   :  { %440 = vsyncpa [#allocation3 + $0x1], 1 }

</bundles_post_ra>
